<compile_context>
chip_gen: v6e
topology: v6e:2x2x1
jax: 0.10.0
libtpu: 0.0.40
codegen_flags: <defaults>
</compile_context>

<pallas_src>
import numpy as np
import jax
import jax.numpy as jnp
from jax import lax
from jax.experimental import pallas as pl
from jax.experimental.pallas import tpu as pltpu


_INV_SQRT2 = 1.0 / 1.41421356237


# ----------------------------------------------------------------------------
# Fixed (non-learned) filter weights, computed deterministically in-script.
# ----------------------------------------------------------------------------
def _gaussian_1d(ksize=5, sigma=1.0):
    # Reproduces cv2.getGaussianKernel(ksize, sigma) for sigma > 0.
    x = np.arange(ksize, dtype=np.float64) - (ksize - 1) / 2.0
    k = np.exp(-(x * x) / (2.0 * sigma * sigma))
    return k / k.sum()


def _band(n, taps, offset):
    # M[o, i] = taps[i - o + offset] when the tap lands inside [0, n)
    # (out-of-range taps dropped == zero-padding of the operand).
    m = np.zeros((n, n), np.float64)
    for o in range(n):
        for t, c in enumerate(taps):
            i = o + t - offset
            if 0 <= i < n:
                m[o, i] = c
    return m


def _make_operators(H, W, NB):
    """Composed (gaussian then sobel) banded operators, batched for the MXU."""
    k1 = _gaussian_1d(5, 1.0)                    # separable 5-tap gaussian
    smooth = np.array([1.0, 2.0, 1.0])           # sobel smoothing direction
    diff = np.array([-1.0, 0.0, 1.0])            # sobel derivative direction

    gauss_h = _band(H, k1, 2)                    # gaussian along H, pad=2
    gauss_w = _band(W, k1, 2)                    # gaussian along W, pad=2

    ax = _band(H, smooth, 1) @ gauss_h           # (H, H) left op for grad_x
    ay = _band(H, diff, 1) @ gauss_h             # (H, H) left op for grad_y
    bx = (_band(W, diff, 1) @ gauss_w).T         # (W, W) right op for grad_x
    by = (_band(W, smooth, 1) @ gauss_w).T       # (W, W) right op for grad_y

    a_cat = np.concatenate([ax, ay], axis=0)     # (2H, H): one left dot
    bd_x = np.kron(np.eye(NB), bx)               # (NB*W, NB*W) block-diag
    bd_y = np.kron(np.eye(NB), by)               # applies Bx/By per lane-slot
    return (a_cat.astype(np.float32),
            bd_x.astype(np.float32),
            bd_y.astype(np.float32))


# ----------------------------------------------------------------------------
# Pallas kernel
# ----------------------------------------------------------------------------
def _make_kernel(H):
    def kernel(a_ref, bdx_ref, bdy_ref, x_ref, t_ref, out_ref):
        a = a_ref[...]            # (2H, H)      bf16, resident
        bdx = bdx_ref[...]        # (NBW, NBW)   bf16, resident
        bdy = bdy_ref[...]        # (NBW, NBW)   bf16, resident

        def edge_mag(img):        # img: (H, NBW) f32 -> (H, NBW) f32
            # Left pass (H direction), both sobel variants in one dot:
            u = jnp.dot(a, img.astype(jnp.bfloat16),
                        preferred_element_type=jnp.float32)       # (2H, NBW)
            # Right pass (W direction) per lane-slot via block-diag weights:
            gx = jnp.dot(u[:H].astype(jnp.bfloat16), bdx,
                         preferred_element_type=jnp.float32)       # (H, NBW)
            gy = jnp.dot(u[H:].astype(jnp.bfloat16), bdy,
                         preferred_element_type=jnp.float32)       # (H, NBW)
            return jnp.sqrt(gx * gx + gy * gy) * _INV_SQRT2

        d = jnp.abs(edge_mag(x_ref[...]) - edge_mag(t_ref[...]))   # (H, NBW)
        # Only a sublane reduce here; lane/step reduce deferred to the wrapper
        # so the grid axis stays "parallel" (no cross-step accumulator).
        out_ref[...] = jnp.sum(d, axis=0, keepdims=True)           # (1, NBW)

    return kernel


def gaussian_loss(inputs, targets, *, target_lanes=256):
    """inputs, targets: (N, 1, H, W) float32 -> scalar float32 L1 loss."""
    N, C, H, W = inputs.shape
    assert C == 1, "GaussianConv uses single-channel 1x1xkxk filters"

    # Images per grid step: aim for an MXU free/weight dim of ~target_lanes
    # (128 already saturates v5e; 256 for v6e/v7x).  Never batch more than N.
    NB = max(1, -(-target_lanes // W))
    NB = min(NB, N)
    steps = -(-N // NB)
    Np = steps * NB
    NBW = NB * W

    x = inputs.reshape(N, H, W).astype(jnp.float32)
    t = targets.reshape(N, H, W).astype(jnp.float32)
    if Np != N:
        # Zero images produce zero edge maps on both sides -> contribute 0.
        pad = jnp.zeros((Np - N, H, W), jnp.float32)
        x = jnp.concatenate([x, pad], axis=0)
        t = jnp.concatenate([t, pad], axis=0)

    # Lay NB images side-by-side along lanes: (steps, H, NB*W).  Pure XLA
    # relayout in the wrapper (a no-op reshape when NB == 1); the kernel then
    # never needs an in-kernel transpose / reshape / concat.
    def to_lane_stack(v):
        return (v.reshape(steps, NB, H, W)
                 .transpose(0, 2, 1, 3)
                 .reshape(steps, H, NBW))
    x = to_lane_stack(x)
    t = to_lane_stack(t)

    a_np, bdx_np, bdy_np = _make_operators(H, W, NB)
    a = jnp.asarray(a_np, dtype=jnp.bfloat16)        # bf16 MXU weights,
    bdx = jnp.asarray(bdx_np, dtype=jnp.bfloat16)    # f32 accumulation in
    bdy = jnp.asarray(bdy_np, dtype=jnp.bfloat16)    # the dots below.

    kernel = _make_kernel(H)

    img_spec = pl.BlockSpec((None, H, NBW), lambda n: (n, 0, 0))
    a_spec = pl.BlockSpec((2 * H, H), lambda n: (0, 0))      # resident consts
    b_spec = pl.BlockSpec((NBW, NBW), lambda n: (0, 0))      # (same block)
    out_spec = pl.BlockSpec((None, 1, NBW), lambda n: (n, 0, 0))

    flops = int(steps * 8 * H * NBW * (H + NBW))
    transcendentals = int(2 * steps * H * NBW)
    bytes_accessed = int(2 * steps * H * NBW * 4
                         + (2 * H * H + 2 * NBW * NBW) * 2
                         + steps * NBW * 4)

    partials = pl.pallas_call(
        kernel,
        out_shape=jax.ShapeDtypeStruct((steps, 1, NBW), jnp.float32),
        grid=(steps,),
        in_specs=[a_spec, b_spec, b_spec, img_spec, img_spec],
        out_specs=out_spec,
        compiler_params=pltpu.CompilerParams(
            # No cross-step state -> the batch axis can shard across cores
            # (2x on v7x megacore, neutral on v5e/v6e).
            dimension_semantics=("parallel",),
            # 32 MiB: default on v6e/v7x, raises v5e's 16 MiB scoped default.
            vmem_limit_bytes=32 * 1024 * 1024,
        ),
        cost_estimate=pl.CostEstimate(flops=flops,
                                      transcendentals=transcendentals,
                                      bytes_accessed=bytes_accessed),
    )(a, bdx, bdy, x, t)

    return jnp.sum(partials) * (1.0 / float(N * H * W))


# ----------------------------------------------------------------------------
# Pure-JAX reference (original two-stage conv semantics, full precision)
# ----------------------------------------------------------------------------
def _ref_gaussian_loss(inputs, targets):
    k1 = _gaussian_1d(5, 1.0)
    gk2d = jnp.asarray(np.outer(k1, k1).astype(np.float32))
    sx = jnp.asarray(np.array([[-1, 0, 1], [-2, 0, 2], [-1, 0, 1]], np.float32))
    sy = jnp.asarray(np.array([[-1, -2, -1], [0, 0, 0], [1, 2, 1]], np.float32))

    def conv2d(x, k, pad):
        return lax.conv_general_dilated(
            x, k[None, None, :, :], window_strides=(1, 1),
            padding=[(pad, pad), (pad, pad)],
            dimension_numbers=("NCHW", "OIHW", "NCHW"),
            precision=lax.Precision.HIGHEST)

    def edge(x):
        g = conv2d(x, gk2d, 2)
        gx = conv2d(g, sx, 1)
        gy = conv2d(g, sy, 1)
        return jnp.sqrt(gx * gx + gy * gy) * _INV_SQRT2

    return jnp.mean(jnp.abs(edge(inputs) - edge(targets)))


if __name__ == "__main__":
    key = jax.random.PRNGKey(0)
    k1_, k2_ = jax.random.split(key)
    N, C, H, W = 2, 1, 16, 16
    inputs = jax.random.normal(k1_, (N, C, H, W), jnp.float32)
    targets = jax.random.normal(k2_, (N, C, H, W), jnp.float32)

    loss = jax.block_until_ready(gaussian_loss(inputs, targets))
    ref = jax.block_until_ready(_ref_gaussian_loss(inputs, targets))

    # Kernel runs the filtering on the MXU in bf16 (f32 accumulation); the
    # reference is a HIGHEST-precision XLA conv, so allow ~bf16-level rtol.
    # Loss values are O(0.1-1), so this still catches any semantic bug.
    assert np.allclose(np.asarray(loss), np.asarray(ref),
                       rtol=1e-2, atol=1e-4), (loss, ref)
    print("KERNEL_OK")
</pallas_src>

<mosaic_0001>
module attributes {stable_mosaic.version = 11 : i64} {
  func.func @kernel(%arg0: i32, %arg1: memref<32x16xbf16, #tpu.memory_space<vmem>>, %arg2: memref<32x32xbf16, #tpu.memory_space<vmem>>, %arg3: memref<32x32xbf16, #tpu.memory_space<vmem>>, %arg4: memref<1x16x32xf32, #tpu.memory_space<vmem>>, %arg5: memref<1x16x32xf32, #tpu.memory_space<vmem>>, %arg6: memref<1x1x32xf32, #tpu.memory_space<vmem>>) attributes {dimension_semantics = [#tpu.dimension_semantics<parallel>], iteration_bounds = array<i64: 1>, scalar_prefetch = 0 : i64, scratch_operands = 0 : i64, tpu.core_type = #tpu.core_type<tc>, window_params = [{pipeline_mode = #tpu.pipeline_mode<synchronous>, transform_indices = @transform_0, window_bounds = array<i64: 32, 16>}, {pipeline_mode = #tpu.pipeline_mode<synchronous>, transform_indices = @transform_1, window_bounds = array<i64: 32, 32>}, {pipeline_mode = #tpu.pipeline_mode<synchronous>, transform_indices = @transform_2, window_bounds = array<i64: 32, 32>}, {transform_indices = @transform_3, window_bounds = array<i64: 1, 16, 32>}, {transform_indices = @transform_4, window_bounds = array<i64: 1, 16, 32>}, {transform_indices = @transform_5, window_bounds = array<i64: 1, 1, 32>}]} {
    %c0 = arith.constant 0 : index
    %c0_0 = arith.constant 0 : index
    %0 = vector.load %arg1[%c0, %c0_0] : memref<32x16xbf16, #tpu.memory_space<vmem>>, vector<32x16xbf16>
    %c0_1 = arith.constant 0 : index
    %c0_2 = arith.constant 0 : index
    %1 = vector.load %arg2[%c0_1, %c0_2] : memref<32x32xbf16, #tpu.memory_space<vmem>>, vector<32x32xbf16>
    %c0_3 = arith.constant 0 : index
    %c0_4 = arith.constant 0 : index
    %2 = vector.load %arg3[%c0_3, %c0_4] : memref<32x32xbf16, #tpu.memory_space<vmem>>, vector<32x32xbf16>
    %c0_5 = arith.constant 0 : index
    %c0_6 = arith.constant 0 : index
    %c0_7 = arith.constant 0 : index
    %3 = vector.load %arg4[%c0_5, %c0_6, %c0_7] : memref<1x16x32xf32, #tpu.memory_space<vmem>>, vector<1x16x32xf32>
    %4 = vector.shape_cast %3 : vector<1x16x32xf32> to vector<16x32xf32>
    %5 = arith.truncf %4 : vector<16x32xf32> to vector<16x32xbf16>
    %cst = arith.constant dense<0.000000e+00> : vector<32x32xf32>
    %6 = tpu.matmul %0, %5, %cst {dimension_numbers = #tpu.dot_dimension_numbers<[1], [0], [0], [1], [0, 0, 1, 1], [], []>} : vector<32x16xbf16>, vector<16x32xbf16>, vector<32x32xf32> -> vector<32x32xf32>
    %7 = vector.extract_strided_slice %6 {offsets = [0, 0], sizes = [16, 32], strides = [1, 1]} : vector<32x32xf32> to vector<16x32xf32>
    %8 = arith.truncf %7 : vector<16x32xf32> to vector<16x32xbf16>
    %cst_8 = arith.constant dense<0.000000e+00> : vector<16x32xf32>
    %9 = tpu.matmul %8, %1, %cst_8 {dimension_numbers = #tpu.dot_dimension_numbers<[1], [0], [0], [1], [0, 0, 1, 1], [], []>} : vector<16x32xbf16>, vector<32x32xbf16>, vector<16x32xf32> -> vector<16x32xf32>
    %10 = vector.extract_strided_slice %6 {offsets = [16, 0], sizes = [16, 32], strides = [1, 1]} : vector<32x32xf32> to vector<16x32xf32>
    %11 = arith.truncf %10 : vector<16x32xf32> to vector<16x32xbf16>
    %cst_9 = arith.constant dense<0.000000e+00> : vector<16x32xf32>
    %12 = tpu.matmul %11, %2, %cst_9 {dimension_numbers = #tpu.dot_dimension_numbers<[1], [0], [0], [1], [0, 0, 1, 1], [], []>} : vector<16x32xbf16>, vector<32x32xbf16>, vector<16x32xf32> -> vector<16x32xf32>
    %13 = arith.mulf %9, %9 : vector<16x32xf32>
    %14 = arith.mulf %12, %12 : vector<16x32xf32>
    %15 = arith.addf %13, %14 : vector<16x32xf32>
    %16 = math.sqrt %15 : vector<16x32xf32>
    %cst_10 = arith.constant 0.707106769 : f32
    %17 = vector.broadcast %cst_10 : f32 to vector<16x32xf32>
    %18 = arith.mulf %16, %17 : vector<16x32xf32>
    %c0_11 = arith.constant 0 : index
    %c0_12 = arith.constant 0 : index
    %c0_13 = arith.constant 0 : index
    %19 = vector.load %arg5[%c0_11, %c0_12, %c0_13] : memref<1x16x32xf32, #tpu.memory_space<vmem>>, vector<1x16x32xf32>
    %20 = vector.shape_cast %19 : vector<1x16x32xf32> to vector<16x32xf32>
    %21 = arith.truncf %20 : vector<16x32xf32> to vector<16x32xbf16>
    %cst_14 = arith.constant dense<0.000000e+00> : vector<32x32xf32>
    %22 = tpu.matmul %0, %21, %cst_14 {dimension_numbers = #tpu.dot_dimension_numbers<[1], [0], [0], [1], [0, 0, 1, 1], [], []>} : vector<32x16xbf16>, vector<16x32xbf16>, vector<32x32xf32> -> vector<32x32xf32>
    %23 = vector.extract_strided_slice %22 {offsets = [0, 0], sizes = [16, 32], strides = [1, 1]} : vector<32x32xf32> to vector<16x32xf32>
    %24 = arith.truncf %23 : vector<16x32xf32> to vector<16x32xbf16>
    %cst_15 = arith.constant dense<0.000000e+00> : vector<16x32xf32>
    %25 = tpu.matmul %24, %1, %cst_15 {dimension_numbers = #tpu.dot_dimension_numbers<[1], [0], [0], [1], [0, 0, 1, 1], [], []>} : vector<16x32xbf16>, vector<32x32xbf16>, vector<16x32xf32> -> vector<16x32xf32>
    %26 = vector.extract_strided_slice %22 {offsets = [16, 0], sizes = [16, 32], strides = [1, 1]} : vector<32x32xf32> to vector<16x32xf32>
    %27 = arith.truncf %26 : vector<16x32xf32> to vector<16x32xbf16>
    %cst_16 = arith.constant dense<0.000000e+00> : vector<16x32xf32>
    %28 = tpu.matmul %27, %2, %cst_16 {dimension_numbers = #tpu.dot_dimension_numbers<[1], [0], [0], [1], [0, 0, 1, 1], [], []>} : vector<16x32xbf16>, vector<32x32xbf16>, vector<16x32xf32> -> vector<16x32xf32>
    %29 = arith.mulf %25, %25 : vector<16x32xf32>
    %30 = arith.mulf %28, %28 : vector<16x32xf32>
    %31 = arith.addf %29, %30 : vector<16x32xf32>
    %32 = math.sqrt %31 : vector<16x32xf32>
    %cst_17 = arith.constant 0.707106769 : f32
    %33 = vector.broadcast %cst_17 : f32 to vector<16x32xf32>
    %34 = arith.mulf %32, %33 : vector<16x32xf32>
    %35 = arith.subf %18, %34 : vector<16x32xf32>
    %36 = math.absf %35 : vector<16x32xf32>
    %cst_18 = arith.constant dense<0.000000e+00> : vector<32xf32>
    %37 = vector.multi_reduction <add>, %36, %cst_18 [0] : vector<16x32xf32> to vector<32xf32>
    %38 = vector.shape_cast %37 : vector<32xf32> to vector<1x32xf32>
    %c0_19 = arith.constant 0 : index
    %c0_20 = arith.constant 0 : index
    %c0_21 = arith.constant 0 : index
    %39 = vector.load %arg6[%c0_19, %c0_20, %c0_21] : memref<1x1x32xf32, #tpu.memory_space<vmem>>, vector<1x1x32xf32>
    %40 = vector.shape_cast %39 : vector<1x1x32xf32> to vector<1x32xf32>
    %41 = vector.shape_cast %38 : vector<1x32xf32> to vector<1x1x32xf32>
    tpu.vector_store %arg6[%c0_19, %c0_20, %c0_21], %41 {strides = array<i32>} : memref<1x1x32xf32, #tpu.memory_space<vmem>>, vector<1x1x32xf32>,
    return
  }
  func.func @transform_0(%arg0: i32) -> (i32, i32) {
    %c0_i32 = arith.constant 0 : i32
    %c0_i32_0 = arith.constant 0 : i32
    %c0_i32_1 = arith.constant 0 : i32
    return %c0_i32, %c0_i32_0 : i32, i32
  }
  func.func @transform_1(%arg0: i32) -> (i32, i32) {
    %c0_i32 = arith.constant 0 : i32
    %c0_i32_0 = arith.constant 0 : i32
    %c0_i32_1 = arith.constant 0 : i32
    return %c0_i32, %c0_i32_0 : i32, i32
  }
  func.func @transform_2(%arg0: i32) -> (i32, i32) {
    %c0_i32 = arith.constant 0 : i32
    %c0_i32_0 = arith.constant 0 : i32
    %c0_i32_1 = arith.constant 0 : i32
    return %c0_i32, %c0_i32_0 : i32, i32
  }
  func.func @transform_3(%arg0: i32) -> (i32, i32, i32) {
    %c0_i32 = arith.constant 0 : i32
    %c0_i32_0 = arith.constant 0 : i32
    %c0_i32_1 = arith.constant 0 : i32
    return %arg0, %c0_i32, %c0_i32_0 : i32, i32, i32
  }
  func.func @transform_4(%arg0: i32) -> (i32, i32, i32) {
    %c0_i32 = arith.constant 0 : i32
    %c0_i32_0 = arith.constant 0 : i32
    %c0_i32_1 = arith.constant 0 : i32
    return %arg0, %c0_i32, %c0_i32_0 : i32, i32, i32
  }
  func.func @transform_5(%arg0: i32) -> (i32, i32, i32) {
    %c0_i32 = arith.constant 0 : i32
    %c0_i32_0 = arith.constant 0 : i32
    %c0_i32_1 = arith.constant 0 : i32
    return %arg0, %c0_i32, %c0_i32_0 : i32, i32, i32
  }
}

</mosaic_0001>

<bundles_post_ra>
// kernel: tpu_custom_call.1
= control target key start
LH: loop header
LB: loop body
LE: loop exit
PB: predicated region body
PF: predicated region fallthrough
CT: control target
= control target key end

     0   :  { %10 = vsyncpa [#allocation3], 0  ;;  %s740_s0 = inlined_call_operand.vmem [shape: bf16[32,16], index: 0, kind: input, shape index: {}]   ;;  %s741_s1 = inlined_call_operand.vmem [shape: bf16[32,32], index: 1, kind: input, shape index: {}]   ;;  %s742_s2 = inlined_call_operand.hbm [shape: bf16[32,32], index: 2, kind: input, shape index: {}]   ;;  %s743_s3 = inlined_call_operand.hbm [shape: f32[1,16,32], index: 3, kind: input, shape index: {}]   ;;  %s744_s4 = inlined_call_operand.hbm [shape: f32[1,16,32], index: 4, kind: input, shape index: {}]   ;;  %s745_s5 = inlined_call_operand.hbm [shape: f32[1,1,32], index: 5, kind: output, shape index: {}]  }
   0x1   :  { %11 = vsyncpa [#allocation6], 0 }
   0x2   :  { %12 = vsyncpa [#allocation4], 0  ;;  %s662_s18 = smov [#allocation5]  }
   0x3   :  { %s34_s19 = sshll.u32 %s662_s18, 4  ;;  %s35_s19 = int_to_ptr.vmem [resolvable:$true] %s34_s19 }
   0x4   :  { %s584_s20 = scalar_lea.vmem %s35_s19, 256  ;;  %p589_p1 = scmp.lt.s32.totalorder %s35_s19, %s35_s19 }
   0x5   :  { %p585_p0 = scmp.ne.s32.totalorder %s35_s19, %s584_s20  ;;  %p590_p2 = scmp.lt.s32.totalorder %s584_s20, %s584_s20 }
   0x7   :  { %p591_p3 = por %p590_p2, %p589_p1 }
   0x9   :  { %p592_p4 = pnand %p591_p3, %p585_p0 }
   0xb   :  { %595 = shalt.err (!%p592_p4)
}
   0xc   :  { %s663_s21 = smov 128   ;;  %s664_s22 = smov 8  }
   0xd   :  { %40 = dma.hbm_to_vmem [thread:$0]  %s743_s3, 256, %s35_s19, [#allocation6], %s663_s21, %s663_s21, %s664_s22  }
   0xe   :  { %s665_s25 = smov [#allocation2]  }
   0xf   :  { %s22_s26 = sshll.u32 %s665_s25, 4  ;;  %s23_s26 = int_to_ptr.vmem [resolvable:$true] %s22_s26 }
  0x10   :  { %s604_s27 = scalar_lea.vmem %s23_s26, 256  ;;  %p609_p6 = scmp.lt.s32.totalorder %s23_s26, %s23_s26 }
  0x11   :  { %p605_p5 = scmp.ne.s32.totalorder %s23_s26, %s604_s27  ;;  %p610_p7 = scmp.lt.s32.totalorder %s604_s27, %s604_s27 }
  0x13   :  { %p611_p8 = por %p610_p7, %p609_p6 }
  0x15   :  { %p612_p9 = pnand %p611_p8, %p605_p5 }
  0x17   :  { %615 = shalt.err (!%p612_p9)
}
  0x18   :  { %s666_s28 = smov 64   ;;  %s667_s29 = smov 4  }
  0x19   :  { %28 = dma.hbm_to_vmem [thread:$0]  %s742_s2, 256, %s23_s26, [#allocation3], %s666_s28, %s666_s28, %s667_s29  }
  0x1a   :  { %s668_s7 = smov [#allocation7]  }
  0x1b   :  { %s46_s8 = sshll.u32 %s668_s7, 4  ;;  %s47_s8 = int_to_ptr.vmem [resolvable:$true] %s46_s8 }
  0x1c   :  { %s624_s3 = scalar_lea.vmem %s47_s8, 256  ;;  %p629_p11 = scmp.lt.s32.totalorder %s47_s8, %s47_s8 }
  0x1d   :  { %p625_p10 = scmp.ne.s32.totalorder %s47_s8, %s624_s3  ;;  %p630_p12 = scmp.lt.s32.totalorder %s624_s3, %s624_s3 }
  0x1f   :  { %p631_p13 = por %p630_p12, %p629_p11 }
  0x21   :  { %p632_p0 = pnand %p631_p13, %p625_p10 }
  0x23   :  { %635 = shalt.err (!%p632_p0)
}
  0x24   :  { %52 = dma.hbm_to_vmem [thread:$0]  %s744_s4, 256, %s47_s8, [#allocation6], %s663_s21, %s663_s21, %s664_s22  }
  0x25   :  { %656 = dma.done.wait [#allocation3], 256  }
  0x26   :  { %657 = vsyncadd [#allocation3], 4294967040 }
  0x27   :  { %658 = dma.done.wait [#allocation6], 512  }
  0x28   :  { %659 = vsyncadd [#allocation6], 4294966784  ;;  %v669_v0 = vmov 0.0   ;;  %v75_v1 = vld [vmem:[#allocation5] sm:$0xff]  ;;  %v76_v2 = vld [vmem:[#allocation5 + $0x8] sm:$0xff]  ;;  %vm88_vm0 = vcmask 130048  }
  0x29   :  { %514 = vmatprep.subr.bf16.mxu1 %v669_v0  ;;  %v77_v3 = vpack.c.bf16 %v76_v2, %v75_v1  ;;  %v562_v4 = vld [vmem:[%s740_s0] sm:$0xff]   ;;  %v563_v5 = vld [vmem:[%s740_s0 + $0x8] sm:$0xff]   ;;  %vm670_vm1 = vmmov 0   ;;  %vm157_vm2 = vcmask 261120   ;;  %vm458_vm11 = vcmask 253952  }
  0x2a   :  { %510 = vmatprep.mubr.msk.bf16.mxu0 %vm88_vm0, %v562_v4  ;;  %v564_v6 = vld [vmem:[#allocation2 + $0x8] sm:$0xff]   ;;  %v566_v8 = vld [vmem:[#allocation2] sm:$0xff]   ;;  %518 = vmatprep.mubr.msk.bf16.mxu1 %vm670_vm1, %v669_v0 }
  0x2b   :  { %508 = vmatprep.subr.bf16.mxu0 %v77_v3  ;;  %v565_v7 = vld [vmem:[%s741_s1 + $0x8] sm:$0xff]   ;;  %v567_v9 = vld [vmem:[%s741_s1] sm:$0xff]   ;;  %s671_s1 = smov [#allocation8]  }
  0x2c   :  { %509 = vmatpush3.bf16.msra.mxu0 %v77_v3  ;;  %515 = vmatpush3.bf16.msra.mxu1 %v565_v7  ;;  %v281_v10 = vld [vmem:[#allocation7] sm:$0xff]  ;;  %v282_v11 = vld [vmem:[#allocation7 + $0x8] sm:$0xff]  ;;  %s466_s16 = sshll.u32 %s671_s1, 4  ;;  %s467_s16 = int_to_ptr.vmem [resolvable:$true] %s466_s16 }
  0x2d   :  { %522 = vmatprep.subr.bf16.mxu0 %v669_v0  ;;  %516 = vmatprep.subr.bf16.mxu1 %v669_v0  ;;  %v283_v12 = vpack.c.bf16 %v282_v11, %v281_v10  ;;  %s636_s17 = scalar_lea.vmem %s467_s16, 16  ;;  %s640_s18 = scalar_lea.vmem %s467_s16, 32 }
  0x2e   :  { %p637_p1 = scmp.ne.s32.totalorder %s467_s16, %s636_s17  ;;  %p641_p2 = scmp.lt.s32.totalorder %s467_s16, %s467_s16 }
  0x2f   :  { %511 = vmatmul.mubr.msk.bf16.vlgmr.msra.gmra.mxu0 %vm88_vm0, %v563_v5  ;;  %p642_p3 = scmp.lt.s32.totalorder %s640_s18, %s636_s17 }
  0x30   :  { %523 = vmatpush3.bf16.msra.mxu0 %v564_v6  ;;  %517 = vmatpush3.bf16.msra.mxu1 %v567_v9 }
  0x31   :  { %524 = vmatprep.subr.bf16.mxu0 %v669_v0  ;;  %526 = vmatprep.mubr.msk.bf16.mxu0 %vm670_vm1, %v669_v0  ;;  %p643_p4 = por %p642_p3, %p641_p2 }
  0x32   :  { %530 = vmatprep.subr.bf16.mxu1 %v283_v12 }
  0x33   :  { %p644_p5 = pnand %p643_p4, %p637_p1 }
  0x34   :  { %525 = vmatpush3.bf16.msra.mxu0 %v566_v8 }
  0x35   :  { %536 = vmatprep.subr.bf16.mxu0 %v669_v0 }
  0xef   :  { %v512_v13 = vpop.f32.mrf.mxu0 }
  0xf1   :  { %v129_v14 = vpop.f32.mrf.mxu0 }
  0xf3   :  { %v513_v15 = vpop.f32.mrf.mxu0 }
  0xf4   :  { %v202_v16 = vpack.c.bf16 %v513_v15, %v512_v13 }
  0xf5   :  { %v132_v17 = vpop.f32.mrf.mxu0 }
  0xf6   :  { %v144_v18 = vpack.c.bf16 %v132_v17, %v129_v14  ;;  %527 = vmatmul.mubr.msk.bf16.vlgmr.msra.gmra.mxu0 %vm157_vm2, %v202_v16 }
  0xf7   :  { %537 = vmatpush3.bf16.msra.mxu0 %v565_v7  ;;  %540 = vmatprep.mubr.msk.bf16.mxu0 %vm670_vm1, %v669_v0 }
  0xf8   :  { %519 = vmatmul.mubr.msk.bf16.vlgmr.msra.gmra.mxu1 %vm157_vm2, %v144_v18  ;;  %538 = vmatprep.subr.bf16.mxu0 %v669_v0 }
  0xf9   :  { %531 = vmatpush3.bf16.msra.mxu1 %v283_v12  ;;  %532 = vmatprep.mubr.msk.bf16.mxu1 %vm88_vm0, %v562_v4 }
  0xfa   :  { %544 = vmatprep.subr.bf16.mxu1 %v669_v0 }
  0xfb   :  { %539 = vmatpush3.bf16.msra.mxu0 %v567_v9 }
 0x100   :  { %533 = vmatmul.mubr.msk.bf16.vlgmr.msra.gmra.mxu1 %vm88_vm0, %v563_v5 }
 0x101   :  { %545 = vmatpush3.bf16.msra.mxu1 %v564_v6  ;;  %548 = vmatprep.mubr.msk.bf16.mxu1 %vm670_vm1, %v669_v0 }
 0x102   :  { %546 = vmatprep.subr.bf16.mxu1 %v669_v0 }
 0x105   :  { %547 = vmatpush3.bf16.msra.mxu1 %v566_v8 }
 0x1b6   :  { %v252_v19 = vpop.f32.mrf.mxu0 }
 0x1b7   :  { %v261_v22 = vmul.f32 %v252_v19, %v252_v19 }
 0x1b8   :  { %v195_v20 = vpop.f32.mrf.mxu1  ;;  %v528_v21 = vpop.f32.mrf.mxu0 }
 0x1b9   :  { %v259_v23 = vmul.f32 %v195_v20, %v195_v20 }
 0x1ba   :  { %v520_v24 = vpop.f32.mrf.mxu1  ;;  %v255_v25 = vpop.f32.mrf.mxu0 }
 0x1bb   :  { %v263_v26 = vadd.f32 %v261_v22, %v259_v23  ;;  %v262_v29 = vmul.f32 %v255_v25, %v255_v25 }
 0x1bc   :  { %v198_v27 = vpop.f32.mrf.mxu1  ;;  %v529_v28 = vpop.f32.mrf.mxu0 }
 0x1bd   :  { %v260_v30 = vmul.f32 %v198_v27, %v198_v27  ;;  %568 = vrsqrt.f32 %v263_v26  ;;  %vm267_vm3 = vcmp.eq.f32.partialorder %v263_v26, inf  ;;  %v270_v59 = vand.u32 2147483648, %v263_v26 }
 0x1be   :  { %v521_v31 = vpop.f32.mrf.mxu1  ;;  %vm269_vm4 = vcmp.eq.f32.partialorder %v263_v26, 0.0 }
 0x1bf   :  { %v264_v32 = vadd.f32 %v262_v29, %v260_v30 }
 0x1c0   :  { %v534_v33 = vpop.f32.mrf.mxu1 }
 0x1c1   :  { %570 = vrsqrt.f32 %v264_v32  ;;  %vm274_vm5 = vcmp.eq.f32.partialorder %v264_v32, inf  ;;  %v277_v2 = vand.u32 2147483648, %v264_v32  ;;  %vm276_vm8 = vcmp.eq.f32.partialorder %v264_v32, 0.0 }
 0x1c2   :  { %v318_v34 = vpop.f32.mrf.mxu1 }
 0x1c4   :  { %v535_v35 = vpop.f32.mrf.mxu1 }
 0x1c5   :  { %v378_v36 = vpack.c.bf16 %v535_v35, %v534_v33 }
 0x1c6   :  { %v321_v37 = vpop.f32.mrf.mxu1 }
 0x1c7   :  { %v333_v38 = vpack.c.bf16 %v321_v37, %v318_v34  ;;  %549 = vmatmul.mubr.msk.bf16.vlgmr.msra.gmra.mxu1 %vm157_vm2, %v378_v36 }
 0x1c9   :  { %541 = vmatmul.mubr.msk.bf16.vlgmr.msra.gmra.mxu0 %vm157_vm2, %v333_v38 }
 0x1ca   :  { %v569_v53 = vpop.eup %568 }
 0x1cb   :  { %v266_v54 = vmul.f32 %v569_v53, %v263_v26 }
 0x1cd   :  { %v268_v57 = vsel %vm267_vm3, %v263_v26, %v266_v54 }
 0x1ce   :  { %v571_v55 = vpop.eup %570  ;;  %v271_v62 = vsel %vm269_vm4, %v270_v59, %v268_v57 }
 0x1cf   :  { %v273_v56 = vmul.f32 %v571_v55, %v264_v32  ;;  %v279_v5 = vmul.f32 0.70710677, %v271_v62 }
 0x1d1   :  { %v275_v63 = vsel %vm274_vm5, %v264_v32, %v273_v56 }
 0x1d2   :  { %v278_v8 = vsel %vm276_vm8, %v277_v2, %v275_v63 }
 0x1d3   :  { %v280_v12 = vmul.f32 0.70710677, %v278_v8 }
 0x287   :  { %v416_v39 = vpop.f32.mrf.mxu1 }
 0x288   :  { %v425_v42 = vmul.f32 %v416_v39, %v416_v39 }
 0x289   :  { %v371_v40 = vpop.f32.mrf.mxu0  ;;  %v550_v41 = vpop.f32.mrf.mxu1 }
 0x28a   :  { %v423_v43 = vmul.f32 %v371_v40, %v371_v40 }
 0x28b   :  { %v542_v44 = vpop.f32.mrf.mxu0  ;;  %v419_v45 = vpop.f32.mrf.mxu1 }
 0x28c   :  { %v427_v46 = vadd.f32 %v425_v42, %v423_v43  ;;  %v426_v49 = vmul.f32 %v419_v45, %v419_v45 }
 0x28d   :  { %v374_v47 = vpop.f32.mrf.mxu0  ;;  %v551_v48 = vpop.f32.mrf.mxu1 }
 0x28e   :  { %572 = vrsqrt.f32 %v427_v46  ;;  %v424_v50 = vmul.f32 %v374_v47, %v374_v47  ;;  %vm431_vm6 = vcmp.eq.f32.partialorder %v427_v46, inf  ;;  %v434_v61 = vand.u32 2147483648, %v427_v46 }
 0x28f   :  { %v543_v51 = vpop.f32.mrf.mxu0  ;;  %vm433_vm7 = vcmp.eq.f32.partialorder %v427_v46, 0.0 }
 0x290   :  { %v428_v52 = vadd.f32 %v426_v49, %v424_v50 }
 0x292   :  { %574 = vrsqrt.f32 %v428_v52  ;;  %vm438_vm9 = vcmp.eq.f32.partialorder %v428_v52, inf  ;;  %v441_v7 = vand.u32 2147483648, %v428_v52  ;;  %vm440_vm10 = vcmp.eq.f32.partialorder %v428_v52, 0.0 }
 0x29b   :  { %v573_v58 = vpop.eup %572 }
 0x29c   :  { %v430_v60 = vmul.f32 %v573_v58, %v427_v46 }
 0x29e   :  { %v432_v0 = vsel %vm431_vm6, %v427_v46, %v430_v60 }
 0x29f   :  { %v575_v1 = vpop.eup %574  ;;  %v435_v3 = vsel %vm433_vm7, %v434_v61, %v432_v0 }
 0x2a0   :  { %v437_v4 = vmul.f32 %v575_v1, %v428_v52  ;;  %v443_v6 = vmul.f32 0.70710677, %v435_v3 }
 0x2a2   :  { %v439_v9 = vsel %vm438_vm9, %v428_v52, %v437_v4  ;;  %v445_v10 = vsub.f32 %v279_v5, %v443_v6 }
 0x2a3   :  { %v442_v11 = vsel %vm440_vm10, %v441_v7, %v439_v9 }
 0x2a4   :  { %v444_v13 = vmul.f32 0.70710677, %v442_v11  ;;  %v447_v15 = vand.u32 2147483647, %v445_v10 }
 0x2a6   :  { %v446_v14 = vsub.f32 %v280_v12, %v444_v13  ;;  %v449_v17 = vsel %vm157_vm2, %v447_v15, 0.0 }
 0x2a8   :  { %v448_v16 = vand.u32 2147483647, %v446_v14 }
 0x2aa   :  { %v450_v18 = vsel %vm157_vm2, %v448_v16, 0.0 }
 0x2ab   :  { %v451_v19 = vadd.f32 %v450_v18, %v449_v17 }
 0x2ad   :  { %v452_v20 = vrot.slane %v451_v19, 4 }
 0x2af   :  { %v453_v21 = vadd.f32 %v452_v20, %v451_v19 }
 0x2b1   :  { %v454_v22 = vrot.slane %v453_v21, 2 }
 0x2b3   :  { %v455_v23 = vadd.f32 %v454_v22, %v453_v21 }
 0x2b5   :  { %v456_v24 = vrot.slane %v455_v23, 1 }
 0x2b7   :  { %v457_v25 = vadd.f32 %v456_v24, %v455_v23 }
 0x2b9   :  { %459 = vst.msk [vmem:[#allocation8] sm:$0x1] %vm458_vm11, %v457_v25 }
 0x2ba   :  { %647 = shalt.err (!%p644_p5)
}
 0x2bb   :  { %469 = dma.vmem_to_hbm [thread:$0]  %s467_s16, 16, %s745_s5, [#allocation4]  }
 0x2bc   :  { %660 = dma.done.wait [#allocation4], 16  }
 0x2bd   :  { %661 = vsyncadd [#allocation4], 4294967280 }
 0x2be   :  { %473 = vsyncpa [#allocation3], 1 }
 0x2bf   :  { %474 = vsyncpa [#allocation6], 1 }
 0x2c0   :  { %475 = vsyncpa [#allocation4], 1 }

</bundles_post_ra>
